<compile_context>
chip_gen: v6e
topology: v6e:2x2x1
jax: 0.10.0
libtpu: 0.0.40
codegen_flags: <defaults>
</compile_context>

<pallas_src>
from functools import partial

import jax
import jax.numpy as jnp
from jax.experimental import pallas as pl
from jax.experimental.pallas import tpu as pltpu

F32 = jnp.float32


# ---------------------------------------------------------------------------
# Fused single-kernel path: avg-pool + MLP + sigmoid + gating multiply.
# One grid step handles Bt batch elements.
# ---------------------------------------------------------------------------
def _fused_channel_gate_kernel(x_ref, w1t_ref, b1_ref, w2t_ref, b2_ref, o_ref, *, inv_hw):
    # x_ref : (Bt, C, HWp) in the input's native dtype (spatial lanes, padded with zeros)
    # w1t   : (C, Cr)  b1: (1, Cr)   -- torch Linear(C, Cr) weight transposed / bias row
    # w2t   : (Cr, C)  b2: (1, C)    -- torch Linear(Cr, C) weight transposed / bias row

    # AdaptiveAvgPool2d(1): zero-padded lanes contribute 0; divide by the true HW.
    avg = jnp.sum(x_ref[...].astype(F32), axis=-1) * inv_hw          # (Bt, C)

    # MLP in f32: Linear(C,Cr) -> LeakyReLU(0.05) -> Linear(Cr,C)   (real MXU matmuls)
    h = jnp.dot(avg, w1t_ref[...], preferred_element_type=F32) + b1_ref[...]   # (Bt, Cr)
    h = jnp.where(h >= 0.0, h, 0.05 * h)
    s = jnp.dot(h, w2t_ref[...], preferred_element_type=F32) + b2_ref[...]     # (Bt, C)

    # sigmoid(s) = 1 / (1 + exp(-s)) : exp + reciprocal both on the EUP slot.
    gate = pl.reciprocal(1.0 + jnp.exp(-s), approx=True)             # (Bt, C)

    # f32 multiply (v5e has no bf16 VPU), store back in native dtype, full-lane vst.
    o_ref[...] = (x_ref[...].astype(F32) * gate[:, :, None]).astype(o_ref.dtype)


# ---------------------------------------------------------------------------
# Two-pass fallback (large C*HW): pass 1 = channel means over HW chunks.
# ---------------------------------------------------------------------------
def _channel_mean_kernel(x_ref, mean_ref, *, inv_hw):
    # x_ref: (1, C, HWc) native dtype;  mean_ref: (1, C, 1) f32, resident over the HW axis.
    @pl.when(pl.program_id(1) == 0)
    def _():
        mean_ref[...] = jnp.zeros_like(mean_ref)
    mean_ref[...] += jnp.sum(x_ref[...].astype(F32), axis=-1, keepdims=True) * inv_hw


# Pass 2 = apply precomputed (B, C, 1) gate to x, streamed over HW chunks.
def _apply_gate_kernel(x_ref, g_ref, o_ref):
    o_ref[...] = (x_ref[...].astype(F32) * g_ref[...]).astype(o_ref.dtype)


# ---------------------------------------------------------------------------
# Host-side wrapper
# ---------------------------------------------------------------------------
def _round_up(a, m):
    return ((a + m - 1) // m) * m


def _clamp_vmem(nbytes):
    return int(min(max(nbytes, 16 << 20), 48 << 20))


@partial(jax.jit, static_argnames=("force_two_pass",))
def channel_gate(x, w1, b1, w2, b2, *, force_two_pass=False):
    """x: (B, C, H, W) NCHW (any float dtype).
    w1: (C//r, C), b1: (C//r,), w2: (C, C//r), b2: (C,)  (torch Linear layouts)."""
    B, C, H, W = x.shape
    Cr = w1.shape[0]
    HW = H * W
    HWp = _round_up(HW, 128)                      # lane-dense, unmasked stores
    itemsize = x.dtype.itemsize
    inv_hw = 1.0 / HW

    # Reshape (no dtype change) + zero-pad spatial lanes up to a multiple of 128.
    x3 = x.reshape(B, C, HW)
    if HWp != HW:
        x3 = jnp.pad(x3, ((0, 0), (0, 0), (0, HWp - HW)))

    # Weights in matmul-friendly row layout, f32 (tiny).
    w1t = w1.T.astype(F32)                        # (C, Cr)
    w2t = w2.T.astype(F32)                        # (Cr, C)
    b1r = b1.reshape(1, Cr).astype(F32)
    b2r = b2.reshape(1, C).astype(F32)
    w_bytes = (w1t.size + w2t.size + b1r.size + b2r.size) * 4

    per_batch_f32 = C * HWp * 4                   # f32 working-set per batch element
    TARGET_BLOCK_F32 = 4 << 20                    # ~4 MiB f32 working set per step
    MAX_FUSED_PER_BATCH_F32 = 6 << 20             # beyond this, a single-batch block is too
                                                  # big to keep 2-deep buffering on v7x
    use_two_pass = force_two_pass or (per_batch_f32 > MAX_FUSED_PER_BATCH_F32)

    if not use_two_pass:
        # ---- fused single-kernel path ------------------------------------
        bt_max = max(1, TARGET_BLOCK_F32 // per_batch_f32)
        bt_max = min(bt_max, B)
        if B >= 2:
            bt_max = min(bt_max, B // 2)          # keep >= 2 grid steps (v7x 2-TC balance)
        bt_max = max(1, bt_max)
        Bt = 1
        for d in range(1, bt_max + 1):            # largest divisor of B <= bt_max
            if B % d == 0:
                Bt = d
        grid = (B // Bt,)

        in_blk = Bt * C * HWp * itemsize
        f32_tmp = Bt * per_batch_f32
        vmem_limit = _clamp_vmem(2 * (in_blk + in_blk) + 2 * f32_tmp + 2 * w_bytes + (4 << 20))

        out3 = pl.pallas_call(
            partial(_fused_channel_gate_kernel, inv_hw=inv_hw),
            out_shape=jax.ShapeDtypeStruct((B, C, HWp), x.dtype),
            grid_spec=pltpu.PrefetchScalarGridSpec(
                num_scalar_prefetch=0,
                grid=grid,
                in_specs=[
                    pl.BlockSpec((Bt, C, HWp), lambda i: (i, 0, 0)),   # activations
                    pl.BlockSpec((C, Cr), lambda i: (0, 0)),           # weights: resident
                    pl.BlockSpec((1, Cr), lambda i: (0, 0)),
                    pl.BlockSpec((Cr, C), lambda i: (0, 0)),
                    pl.BlockSpec((1, C), lambda i: (0, 0)),
                ],
                out_specs=pl.BlockSpec((Bt, C, HWp), lambda i: (i, 0, 0)),
            ),
            compiler_params=pltpu.CompilerParams(
                dimension_semantics=("parallel",),
                vmem_limit_bytes=vmem_limit,
            ),
        )(x3, w1t, b1r, w2t, b2r)

    else:
        # ---- two-pass fallback: stream x over HW chunks -------------------
        TARGET_CHUNK_F32 = 2 << 20
        hwc = max(128, ((TARGET_CHUNK_F32 // (C * 4)) // 128) * 128)
        hwc = min(hwc, HWp)
        HWp2 = _round_up(HWp, hwc)
        if HWp2 != HWp:
            x3 = jnp.pad(x3, ((0, 0), (0, 0), (0, HWp2 - HWp)))
        n_hw = HWp2 // hwc

        chunk_native = C * hwc * itemsize
        chunk_f32 = C * hwc * 4

        # Pass 1: per-(b, c) means, accumulated over HW chunks.
        means = pl.pallas_call(
            partial(_channel_mean_kernel, inv_hw=inv_hw),
            out_shape=jax.ShapeDtypeStruct((B, C, 1), F32),
            grid_spec=pltpu.PrefetchScalarGridSpec(
                num_scalar_prefetch=0,
                grid=(B, n_hw),
                in_specs=[pl.BlockSpec((1, C, hwc), lambda b, h: (b, 0, h))],
                out_specs=pl.BlockSpec((1, C, 1), lambda b, h: (b, 0, 0)),
            ),
            compiler_params=pltpu.CompilerParams(
                dimension_semantics=("parallel", "arbitrary"),
                vmem_limit_bytes=_clamp_vmem(2 * chunk_native + chunk_f32 + (4 << 20)),
            ),
        )(x3)

        # Tiny (B, C) MLP + sigmoid between the two streaming kernels.
        m = means[:, :, 0]                                       # (B, C) f32
        h = m @ w1t + b1r                                        # (B, Cr)
        h = jnp.where(h >= 0.0, h, 0.05 * h)
        s = h @ w2t + b2r                                        # (B, C)
        gate = jax.nn.sigmoid(s)[:, :, None]                     # (B, C, 1) f32

        # Pass 2: gating multiply, streamed over HW chunks.
        out3 = pl.pallas_call(
            _apply_gate_kernel,
            out_shape=jax.ShapeDtypeStruct((B, C, HWp2), x.dtype),
            grid_spec=pltpu.PrefetchScalarGridSpec(
                num_scalar_prefetch=0,
                grid=(B, n_hw),
                in_specs=[
                    pl.BlockSpec((1, C, hwc), lambda b, h: (b, 0, h)),
                    pl.BlockSpec((1, C, 1), lambda b, h: (b, 0, 0)),
                ],
                out_specs=pl.BlockSpec((1, C, hwc), lambda b, h: (b, 0, h)),
            ),
            compiler_params=pltpu.CompilerParams(
                dimension_semantics=("parallel", "parallel"),
                vmem_limit_bytes=_clamp_vmem(4 * chunk_native + chunk_f32 + (4 << 20)),
            ),
        )(x3, gate)

    return out3[:, :, :HW].reshape(B, C, H, W)


# ---------------------------------------------------------------------------
# Pure-JAX reference (for correctness check)
# ---------------------------------------------------------------------------
def channel_gate_ref(x, w1, b1, w2, b2):
    avg = jnp.mean(x.astype(F32), axis=(2, 3))           # (B, C)
    h = avg @ w1.T + b1                                   # (B, Cr)
    h = jnp.where(h >= 0.0, h, 0.05 * h)                  # LeakyReLU(0.05)
    s = h @ w2.T + b2                                     # (B, C)
    gate = jax.nn.sigmoid(s)
    return x.astype(F32) * gate[:, :, None, None]


if __name__ == "__main__":
    key = jax.random.PRNGKey(0)
    kx, kw1, kb1, kw2, kb2 = jax.random.split(key, 5)

    # Shapes consistent with ChannelGate(gate_channels=16, reduction_ratio=4).
    B, C, H, W = 2, 16, 16, 16
    r = 4
    Cr = C // r

    x = jax.random.normal(kx, (B, C, H, W), F32)
    w1 = 0.3 * jax.random.normal(kw1, (Cr, C), F32)   # torch Linear(C, Cr).weight layout
    b1 = 0.1 * jax.random.normal(kb1, (Cr,), F32)
    w2 = 0.3 * jax.random.normal(kw2, (C, Cr), F32)   # torch Linear(Cr, C).weight layout
    b2 = 0.1 * jax.random.normal(kb2, (C,), F32)

    ref = channel_gate_ref(x, w1, b1, w2, b2)

    # 1) Fused single-kernel path, f32 I/O, lane-aligned spatial dim.
    out = jax.block_until_ready(channel_gate(x, w1, b1, w2, b2))
    assert out.shape == (B, C, H, W) and out.dtype == x.dtype
    assert bool(jnp.all(jnp.isfinite(out)))
    assert bool(jnp.allclose(out, ref, atol=2e-2, rtol=2e-2))

    # 2) Fused path with native bf16 I/O (no wrapper-side casts).
    xb = x.astype(jnp.bfloat16)
    outb = jax.block_until_ready(channel_gate(xb, w1, b1, w2, b2))
    assert outb.dtype == jnp.bfloat16
    assert bool(jnp.allclose(outb.astype(F32), ref, atol=6e-2, rtol=6e-2))

    # 3) Non-multiple-of-128 spatial dim (12x12 -> padded to 256 lanes), both paths.
    H2 = W2 = 12
    x2 = jax.random.normal(kx, (B, C, H2, W2), F32)
    ref2 = channel_gate_ref(x2, w1, b1, w2, b2)
    out2a = jax.block_until_ready(channel_gate(x2, w1, b1, w2, b2))
    assert bool(jnp.allclose(out2a, ref2, atol=2e-2, rtol=2e-2))
    out2b = jax.block_until_ready(channel_gate(x2, w1, b1, w2, b2, force_two_pass=True))
    assert bool(jnp.allclose(out2b, ref2, atol=2e-2, rtol=2e-2))

    print("KERNEL_OK")
</pallas_src>

<mosaic_0001>
module attributes {stable_mosaic.version = 11 : i64} {
  func.func @_fused_channel_gate_kernel(%arg0: i32, %arg1: memref<1x16x256xf32, #tpu.memory_space<vmem>>, %arg2: memref<16x4xf32, #tpu.memory_space<vmem>>, %arg3: memref<1x4xf32, #tpu.memory_space<vmem>>, %arg4: memref<4x16xf32, #tpu.memory_space<vmem>>, %arg5: memref<1x16xf32, #tpu.memory_space<vmem>>, %arg6: memref<1x16x256xf32, #tpu.memory_space<vmem>>) attributes {dimension_semantics = [#tpu.dimension_semantics<parallel>], iteration_bounds = array<i64: 2>, scalar_prefetch = 0 : i64, scratch_operands = 0 : i64, tpu.core_type = #tpu.core_type<tc>, window_params = [{transform_indices = @transform_0, window_bounds = array<i64: 1, 16, 256>}, {pipeline_mode = #tpu.pipeline_mode<synchronous>, transform_indices = @transform_1, window_bounds = array<i64: 16, 4>}, {pipeline_mode = #tpu.pipeline_mode<synchronous>, transform_indices = @transform_2, window_bounds = array<i64: 1, 4>}, {pipeline_mode = #tpu.pipeline_mode<synchronous>, transform_indices = @transform_3, window_bounds = array<i64: 4, 16>}, {pipeline_mode = #tpu.pipeline_mode<synchronous>, transform_indices = @transform_4, window_bounds = array<i64: 1, 16>}, {transform_indices = @transform_5, window_bounds = array<i64: 1, 16, 256>}]} {
    %c0 = arith.constant 0 : index
    %c0_0 = arith.constant 0 : index
    %c0_1 = arith.constant 0 : index
    %0 = vector.load %arg1[%c0, %c0_0, %c0_1] : memref<1x16x256xf32, #tpu.memory_space<vmem>>, vector<1x16x256xf32>
    %cst = arith.constant dense<0.000000e+00> : vector<1x16xf32>
    %1 = vector.multi_reduction <add>, %0, %cst [2] : vector<1x16x256xf32> to vector<1x16xf32>
    %cst_2 = arith.constant 3.906250e-03 : f32
    %2 = vector.broadcast %cst_2 : f32 to vector<1x16xf32>
    %3 = arith.mulf %1, %2 : vector<1x16xf32>
    %c0_3 = arith.constant 0 : index
    %c0_4 = arith.constant 0 : index
    %4 = vector.load %arg2[%c0_3, %c0_4] : memref<16x4xf32, #tpu.memory_space<vmem>>, vector<16x4xf32>
    %cst_5 = arith.constant dense<0.000000e+00> : vector<1x4xf32>
    %5 = tpu.matmul %3, %4, %cst_5 {dimension_numbers = #tpu.dot_dimension_numbers<[1], [0], [0], [1], [0, 0, 1, 1], [], []>} : vector<1x16xf32>, vector<16x4xf32>, vector<1x4xf32> -> vector<1x4xf32>
    %c0_6 = arith.constant 0 : index
    %c0_7 = arith.constant 0 : index
    %6 = vector.load %arg3[%c0_6, %c0_7] : memref<1x4xf32, #tpu.memory_space<vmem>>, vector<1x4xf32>
    %7 = arith.addf %5, %6 : vector<1x4xf32>
    %cst_8 = arith.constant 0.000000e+00 : f32
    %8 = vector.broadcast %cst_8 : f32 to vector<1x4xf32>
    %9 = arith.cmpf oge, %7, %8 : vector<1x4xf32>
    %cst_9 = arith.constant 5.000000e-02 : f32
    %10 = vector.broadcast %cst_9 : f32 to vector<1x4xf32>
    %11 = arith.mulf %10, %7 : vector<1x4xf32>
    %12 = arith.select %9, %7, %11 : vector<1x4xi1>, vector<1x4xf32>
    %c0_10 = arith.constant 0 : index
    %c0_11 = arith.constant 0 : index
    %13 = vector.load %arg4[%c0_10, %c0_11] : memref<4x16xf32, #tpu.memory_space<vmem>>, vector<4x16xf32>
    %cst_12 = arith.constant dense<0.000000e+00> : vector<1x16xf32>
    %14 = tpu.matmul %12, %13, %cst_12 {dimension_numbers = #tpu.dot_dimension_numbers<[1], [0], [0], [1], [0, 0, 1, 1], [], []>} : vector<1x4xf32>, vector<4x16xf32>, vector<1x16xf32> -> vector<1x16xf32>
    %c0_13 = arith.constant 0 : index
    %c0_14 = arith.constant 0 : index
    %15 = vector.load %arg5[%c0_13, %c0_14] : memref<1x16xf32, #tpu.memory_space<vmem>>, vector<1x16xf32>
    %16 = arith.addf %14, %15 : vector<1x16xf32>
    %cst_15 = arith.constant 0.000000e+00 : f32
    %17 = vector.broadcast %cst_15 : f32 to vector<1x16xf32>
    %18 = arith.subf %17, %16 : vector<1x16xf32>
    %19 = math.exp %18 : vector<1x16xf32>
    %cst_16 = arith.constant 1.000000e+00 : f32
    %20 = vector.broadcast %cst_16 : f32 to vector<1x16xf32>
    %21 = arith.addf %20, %19 : vector<1x16xf32>
    %22 = tpu.reciprocal %21 {approx = true} : vector<1x16xf32> -> vector<1x16xf32>
    %c0_17 = arith.constant 0 : index
    %c0_18 = arith.constant 0 : index
    %c0_19 = arith.constant 0 : index
    %23 = vector.load %arg1[%c0_17, %c0_18, %c0_19] : memref<1x16x256xf32, #tpu.memory_space<vmem>>, vector<1x16x256xf32>
    %24 = vector.shape_cast %22 : vector<1x16xf32> to vector<1x16x1xf32>
    %25 = vector.broadcast %24 : vector<1x16x1xf32> to vector<1x16x256xf32>
    %26 = arith.mulf %23, %25 : vector<1x16x256xf32>
    %c0_20 = arith.constant 0 : index
    %c0_21 = arith.constant 0 : index
    %c0_22 = arith.constant 0 : index
    %27 = vector.load %arg6[%c0_20, %c0_21, %c0_22] : memref<1x16x256xf32, #tpu.memory_space<vmem>>, vector<1x16x256xf32>
    tpu.vector_store %arg6[%c0_20, %c0_21, %c0_22], %26 {strides = array<i32>} : memref<1x16x256xf32, #tpu.memory_space<vmem>>, vector<1x16x256xf32>,
    return
  }
  func.func @transform_0(%arg0: i32) -> (i32, i32, i32) {
    %c0_i32 = arith.constant 0 : i32
    %c0_i32_0 = arith.constant 0 : i32
    %c0_i32_1 = arith.constant 0 : i32
    return %arg0, %c0_i32, %c0_i32_0 : i32, i32, i32
  }
  func.func @transform_1(%arg0: i32) -> (i32, i32) {
    %c0_i32 = arith.constant 0 : i32
    %c0_i32_0 = arith.constant 0 : i32
    %c0_i32_1 = arith.constant 0 : i32
    return %c0_i32, %c0_i32_0 : i32, i32
  }
  func.func @transform_2(%arg0: i32) -> (i32, i32) {
    %c0_i32 = arith.constant 0 : i32
    %c0_i32_0 = arith.constant 0 : i32
    %c0_i32_1 = arith.constant 0 : i32
    return %c0_i32, %c0_i32_0 : i32, i32
  }
  func.func @transform_3(%arg0: i32) -> (i32, i32) {
    %c0_i32 = arith.constant 0 : i32
    %c0_i32_0 = arith.constant 0 : i32
    %c0_i32_1 = arith.constant 0 : i32
    return %c0_i32, %c0_i32_0 : i32, i32
  }
  func.func @transform_4(%arg0: i32) -> (i32, i32) {
    %c0_i32 = arith.constant 0 : i32
    %c0_i32_0 = arith.constant 0 : i32
    %c0_i32_1 = arith.constant 0 : i32
    return %c0_i32, %c0_i32_0 : i32, i32
  }
  func.func @transform_5(%arg0: i32) -> (i32, i32, i32) {
    %c0_i32 = arith.constant 0 : i32
    %c0_i32_0 = arith.constant 0 : i32
    %c0_i32_1 = arith.constant 0 : i32
    return %arg0, %c0_i32, %c0_i32_0 : i32, i32, i32
  }
}

</mosaic_0001>

<bundles_post_ra>
// kernel: channel_gate.1
= control target key start
LH: loop header
LB: loop body
LE: loop exit
PB: predicated region body
PF: predicated region fallthrough
CT: control target
= control target key end

     0   :  { %s577_s18 = smov 0   ;;  %s632_s0 = inlined_call_operand.vmem [shape: f32[2,16,256], index: 0, kind: input, shape index: {}]   ;;  %s633_s1 = inlined_call_operand.vmem [shape: f32[16,4], index: 1, kind: input, shape index: {}]   ;;  %s634_s2 = inlined_call_operand.vmem [shape: f32[1,4], index: 2, kind: input, shape index: {}]   ;;  %s635_s3 = inlined_call_operand.vmem [shape: f32[4,16], index: 3, kind: input, shape index: {}]   ;;  %s636_s4 = inlined_call_operand.vmem [shape: f32[1,16], index: 4, kind: input, shape index: {}]   ;;  %s637_s5 = inlined_call_operand.vmem [shape: f32[2,16,256], index: 5, kind: output, shape index: {}]  }
   0x1 LB: > { %s490_s19 = sadd.s32 4294967295, %s543_s18   ;;  %p494_p0 = scmp.ge.s32.totalorder %s543_s18, 1  ;;  %s543_s18 = sphi %s577_s18, %s15_s18  }
   0x2   : > { %p187_p1 = scmp.lt.s32.totalorder %s543_s18, 3 }
   0x4   : > { %p188_p2 = pnand %p494_p0, %p187_p1 }
   0x5   : > { %p215_p3 = scmp.lt.s32.totalorder (!%p188_p2), %s490_s19, 1 }
   0x6   : > { %191 = sbr.rel (%p188_p2) target bundleno = 715 (0x2cb), region = 40 }
   0xb   : > { %s639_s19 = smov (!%p215_p3, %s490_s19), 1  ;;  %v545_v6 = vmov 0.0   ;;  %v238_v7 = vld [vmem:[%s633_s1 + $0x8] sm:$0xff]  ;;  %v237_v8 = vld [vmem:[%s633_s1] sm:$0xff]  ;;  %vm546_vm0 = vmmov 0   ;;  %v242_v9 = vlaneseq  ;;  %vm253_vm1 = vcmask 130112  }
   0xc   : > { %s504_s20 = sshll.u32 %s639_s19, 5  ;;  %511 = vmatprep.subr.mxu0 %v545_v6  ;;  %518 = vmatprep.subr.mxu1 %v545_v6  ;;  %vm255_vm2 = vcmask 130048   ;;  %v331_v22 = vld [vmem:[%s635_s3] sm:$0xf]  ;;  %vm337_vm3 = vcmask 1043456   ;;  %vm333_vm5 = vcmask 31744  }
   0xd   : > { %s219_s23 = scalar_lea.vmem %s632_s0, %s504_s20  ;;  %512 = vmatpush3.msra.mxu0 %v238_v7  ;;  %515 = vmatprep.mubr.msk.f32.mxu0 %vm546_vm0, %v545_v6  ;;  %v243_v10 = vand.u32 127, %v242_v9  ;;  %v245_v11 = vshrl.u32 %v242_v9, 7  ;;  %v239_v23 = vld [vmem:[%s634_s2] sm:$0x1]  ;;  %s224_s11 = scalar_lea.vmem %s637_s5, %s504_s20 }
   0xe   : > { %v593_v0 = vld [vmem:[%s219_s23] sm:$0xff]  ;;  %v595_v1 = vld [vmem:[%s219_s23 + $0x8] sm:$0xff]  ;;  %v597_v2 = vld [vmem:[%s219_s23 + $0x10] sm:$0xff]  ;;  %513 = vmatprep.subr.mxu0 %v545_v6  ;;  %520 = vmatprep.mubr.msk.f32.mxu1 %vm546_vm0, %v545_v6 }
   0xf   : > { %v229_v3 = vadd.f32 %v595_v1, %v593_v0  ;;  %v601_v4 = vld [vmem:[%s219_s23 + $0x18] sm:$0xff]  ;;  %514 = vmatpush3.msra.mxu0 %v237_v8  ;;  %v248_v12 = vadd.s32 4294967288, %v243_v10  ;;  %v246_v14 = vsub.s32 %v243_v10, %v245_v11  ;;  %519 = vmatpush3.msk.msra.mxu1 %vm337_vm3, %v331_v22  ;;  %v332_v29 = vld [vmem:[%s636_s4] sm:$0x1]  ;;  %v418_v37 = vsub.s32 0, %v245_v11 }
  0x10   : > { %v232_v5 = vadd.f32 %v601_v4, %v597_v2 }
  0x11   : > { %230 = vadd.xlane.f32.xlu0 %v229_v3  ;;  %v251_v16 = vsub.s32 %v248_v12, %v245_v11 }
  0x15   : > { %233 = vadd.xlane.f32.xlu0 %v232_v5 }
  0x9a   : > { %v231_v13 = vpop.xlane.xlu0 %230 }
  0x9b   : > { %v235_v15 = vmul.f32 0.00390625, %v231_v13 }
  0x9d   : > { %v247_v19 = vrot.slane %v235_v15, %v246_v14 }
  0x9e   : > { %v234_v17 = vpop.xlane.xlu0 %233 }
  0x9f   : > { %v236_v18 = vmul.f32 0.00390625, %v234_v17 }
  0xa1   : > { %v252_v20 = vrot.slane %v236_v18, %v251_v16 }
  0xa3   : > { %v254_v21 = vsel %vm253_vm1, %v252_v20, %v247_v19 }
  0xa4   : > { %516 = vmatmul.mubr.msk.f32.vlgmr.msra.gmra.mxu0 %vm255_vm2, %v254_v21 }
 0x164   : > { %v324_v24 = vpop.f32.mrf.mxu0 }
 0x165   : > { %v325_v25 = vadd.f32 %v324_v24, %v239_v23 }
 0x166   : > { %v517_v26 = vpop.f32.mrf.mxu0 }
 0x167   : > { %vm328_vm4 = vcmp.ge.f32.partialorder %v325_v25, 0.0  ;;  %v329_v27 = vmul.f32 0.05, %v325_v25 }
 0x169   : > { %v330_v28 = vsel %vm328_vm4, %v325_v25, %v329_v27 }
 0x16a   : > { %521 = vmatmul.mubr.msk.f32.vlgmr.msra.gmra.mxu1 %vm333_vm5, %v330_v28 }
 0x22a   : > { %v407_v30 = vpop.f32.mrf.mxu1 }
 0x22b   : > { %v408_v31 = vadd.f32 %v407_v30, %v332_v29 }
 0x22c   : > { %v522_v32 = vpop.f32.mrf.mxu1 }
 0x22d   : > { %v411_v33 = vsub.f32 0.0, %v408_v31 }
 0x22f   : > { %v412_v34 = vmul.f32 1.442695, %v411_v33 }
 0x231   : > { %533 = vpow2.f32 %v412_v34 }
 0x23e   : > { %v534_v35 = vpop.eup %533 }
 0x23f   : > { %v414_v36 = vadd.f32 1.0, %v534_v35 }
 0x241   : > { %535 = vrcp.f32 %v414_v36 }
 0x24e   : > { %v536_v38 = vpop.eup %535 }
 0x24f   : > { %v419_v39 = vrot.slane %v536_v38, %v418_v37 }
 0x251   : > { %421 = vbcast.lane.b32.xlu1 %v419_v39, 256 }
 0x255   : > { %425 = vbcast.lane.b32.xlu1 %v419_v39, 264 }
 0x2c3   : > { %v422_v40 = vpop.permute.xlu1 %421 }
 0x2c4   : > { %v427_v41 = vmul.f32 %v422_v40, %v593_v0  ;;  %v428_v42 = vmul.f32 %v422_v40, %v595_v1 }
 0x2c6   : > { %431 = vst [vmem:[%s224_s11] sm:$0xff] %v427_v41  ;;  %432 = vst [vmem:[%s224_s11 + $0x8] sm:$0xff] %v428_v42 }
 0x2c7   : > { %v426_v43 = vpop.permute.xlu1 %425 }
 0x2c8   : > { %v429_v44 = vmul.f32 %v426_v43, %v597_v2  ;;  %v430_v45 = vmul.f32 %v426_v43, %v601_v4 }
 0x2ca   : > { %433 = vst [vmem:[%s224_s11 + $0x10] sm:$0xff] %v429_v44  ;;  %434 = vst [vmem:[%s224_s11 + $0x18] sm:$0xff] %v430_v45 }
 0x2cb PF: > { %s15_s18 = sadd.s32 1, %s543_s18  }
 0x2cc   : > { %p12_p4 = scmp.ge.s32.totalorder %s15_s18, 4  }
 0x2ce   :  { %14 = sbr.rel (!%p12_p4) target bundleno = 1 (0x1), region = 70 }

</bundles_post_ra>
